<compile_context>
chip_gen: v7x
topology: tpu7x:2x2x1
jax: 0.10.0
libtpu: 0.0.40
codegen_flags: <defaults>
</compile_context>

<pallas_src>
import functools

import jax
import jax.numpy as jnp
from jax.experimental import pallas as pl
from jax.experimental.pallas import tpu as pltpu


def _round_up(x, m):
    return ((x + m - 1) // m) * m


# ---------------------------------------------------------------------------
# Kernels
# ---------------------------------------------------------------------------

def _make_resident_kernel(has_mask):
    """1-D grid over row tiles; both weight matrices resident in VMEM."""

    def kernel(*refs):
        if has_mask:
            x_ref, w1_ref, b1_ref, w2_ref, b2_ref, mask_ref, o_ref = refs
        else:
            x_ref, w1_ref, b1_ref, w2_ref, b2_ref, o_ref = refs

        x = x_ref[...].astype(jnp.bfloat16)          # in-kernel cast; hides under MXU
        h = jnp.dot(x, w1_ref[...], preferred_element_type=jnp.float32)
        h = h + b1_ref[...]
        h = h * jax.nn.sigmoid(h)                    # Swish (EUP + VALU)
        # Dropout(p=0.0) == identity in the forward pass.
        out = jnp.dot(h.astype(jnp.bfloat16), w2_ref[...],
                      preferred_element_type=jnp.float32)
        out = out + b2_ref[...]
        if has_mask:
            out = out * mask_ref[...]                # masked_fill(~mask, 0) == out * mask
        o_ref[...] = out.astype(o_ref.dtype)

    return kernel


def _make_stream_kernel(has_mask):
    """grid = (row tiles, H tiles); weights stream per H tile, f32 accumulator."""

    def kernel(*refs):
        if has_mask:
            x_ref, w1_ref, b1_ref, w2_ref, b2_ref, mask_ref, o_ref, acc_ref = refs
        else:
            x_ref, w1_ref, b1_ref, w2_ref, b2_ref, o_ref, acc_ref = refs

        j = pl.program_id(1)

        @pl.when(j == 0)
        def _():
            acc_ref[...] = jnp.zeros_like(acc_ref)

        x = x_ref[...].astype(jnp.bfloat16)
        h = jnp.dot(x, w1_ref[...], preferred_element_type=jnp.float32)
        h = h + b1_ref[...]
        h = h * jax.nn.sigmoid(h)                    # Swish decomposes exactly per H tile
        acc_ref[...] += jnp.dot(h.astype(jnp.bfloat16), w2_ref[...],
                                preferred_element_type=jnp.float32)

        @pl.when(j == pl.num_programs(1) - 1)
        def _():
            out = acc_ref[...] + b2_ref[...]
            if has_mask:
                out = out * mask_ref[...]
            o_ref[...] = out.astype(o_ref.dtype)

    return kernel


# ---------------------------------------------------------------------------
# pallas_call wrapper
# ---------------------------------------------------------------------------

def _ff_pallas(x2d, w1p, b1p, w2p, b2p, mask2d, *, tm, th, stream, has_mask,
               vmem_limit, out_dtype):
    Mp, Dp = x2d.shape
    Hp = w1p.shape[1]
    n_row_tiles = Mp // tm

    weight_bytes = (w1p.size + w2p.size) * 2        # bf16
    cost = pl.CostEstimate(
        flops=4 * Mp * Dp * Hp,                     # two matmuls: 2 * 2*M*D*H
        transcendentals=Mp * Hp,                    # sigmoid
        bytes_accessed=(Mp * Dp * x2d.dtype.itemsize
                        + Mp * Dp * jnp.dtype(out_dtype).itemsize
                        + weight_bytes * (n_row_tiles if stream else 1)
                        + (Hp + Dp) * 4
                        + (Mp * 4 if has_mask else 0)),
    )

    if not stream:
        grid = (n_row_tiles,)
        in_specs = [
            pl.BlockSpec((tm, Dp), lambda i: (i, 0)),     # x rows (pipelined)
            pl.BlockSpec((Dp, Hp), lambda i: (0, 0)),     # w1 (resident)
            pl.BlockSpec((1, Hp), lambda i: (0, 0)),      # b1
            pl.BlockSpec((Hp, Dp), lambda i: (0, 0)),     # w2 (resident)
            pl.BlockSpec((1, Dp), lambda i: (0, 0)),      # b2
        ]
        if has_mask:
            in_specs.append(pl.BlockSpec((tm, 1), lambda i: (i, 0)))
        out_specs = pl.BlockSpec((tm, Dp), lambda i: (i, 0))
        kernel = _make_resident_kernel(has_mask)
        scratch_shapes = []
        dims = ("parallel",)
    else:
        grid = (n_row_tiles, Hp // th)   # rows first (parallel), H reduction last
        in_specs = [
            pl.BlockSpec((tm, Dp), lambda i, j: (i, 0)),  # x rows (resident across j)
            pl.BlockSpec((Dp, th), lambda i, j: (0, j)),  # w1 column tile (streams)
            pl.BlockSpec((1, th), lambda i, j: (0, j)),   # b1 tile
            pl.BlockSpec((th, Dp), lambda i, j: (j, 0)),  # w2 row tile (streams)
            pl.BlockSpec((1, Dp), lambda i, j: (0, 0)),   # b2
        ]
        if has_mask:
            in_specs.append(pl.BlockSpec((tm, 1), lambda i, j: (i, 0)))
        out_specs = pl.BlockSpec((tm, Dp), lambda i, j: (i, 0))
        kernel = _make_stream_kernel(has_mask)
        scratch_shapes = [pltpu.VMEM((tm, Dp), jnp.float32)]
        dims = ("parallel", "arbitrary")

    operands = [x2d, w1p, b1p, w2p, b2p]
    if has_mask:
        operands.append(mask2d)

    return pl.pallas_call(
        kernel,
        out_shape=jax.ShapeDtypeStruct((Mp, Dp), out_dtype),
        grid=grid,
        in_specs=in_specs,
        out_specs=out_specs,
        scratch_shapes=scratch_shapes,
        compiler_params=pltpu.CompilerParams(
            dimension_semantics=dims,
            vmem_limit_bytes=vmem_limit,
        ),
        cost_estimate=cost,
    )(*operands)


_ff_pallas_jit = jax.jit(
    _ff_pallas,
    static_argnames=("tm", "th", "stream", "has_mask", "vmem_limit", "out_dtype"),
)


# ---------------------------------------------------------------------------
# Tiling / chip heuristics
# ---------------------------------------------------------------------------

@functools.lru_cache(maxsize=1)
def _tpu_defaults():
    vmem_cap = 128 << 20
    try:  # tuning hint only — conservative fallback if unavailable
        vmem_cap = int(getattr(pltpu.get_tpu_info(), "vmem_capacity_bytes", vmem_cap))
    except Exception:
        pass
    if vmem_cap <= (64 << 20):            # v7x-class: 64 MiB VMEM per TensorCore
        return {"tile_m": 256, "tile_h": 512,
                "vmem_limit": 56 << 20, "vmem_budget": 44 << 20}
    return {"tile_m": 512, "tile_h": 1024,  # v5e / v6e: 128 MiB VMEM
            "vmem_limit": 96 << 20, "vmem_budget": 80 << 20}


def _resident_vmem_bytes(tm, dp, hp, x_bytes, out_bytes):
    weights = 2 * (dp * hp + hp * dp) * 2        # bf16 w1+w2, assume double-buffered
    xio = 2 * tm * dp * (x_bytes + out_bytes)    # double-buffered x / out tiles
    hscr = tm * hp * (4 + 2)                     # hidden h: f32 + bf16 copy for 2nd dot
    bias = 2 * (hp + dp) * 4
    return weights + xio + hscr + bias


def _stream_vmem_bytes(tm, th, dp, x_bytes, out_bytes):
    weights = 2 * (dp * th + th * dp) * 2
    xio = 2 * tm * dp * (x_bytes + out_bytes)
    hscr = tm * th * (4 + 2)
    acc = tm * dp * 4
    bias = 2 * (th + dp) * 4
    return weights + xio + hscr + acc + bias


def _pick_tile_h(hp, max_th):
    best = 128
    t = hp // 128
    for cand in range(1, t + 1):
        if t % cand == 0 and 128 * cand <= max_th:
            best = 128 * cand
    return best


# ---------------------------------------------------------------------------
# Public API
# ---------------------------------------------------------------------------

def prepare_ff_params(w1, b1, w2, b2):
    """Hoisted one-time cast+pad of the FeedForward parameters (call at model load)."""
    D, H = w1.shape
    Dp, Hp = _round_up(D, 128), _round_up(H, 128)
    w1p = jnp.pad(w1.astype(jnp.bfloat16), ((0, Dp - D), (0, Hp - H)))
    w2p = jnp.pad(w2.astype(jnp.bfloat16), ((0, Hp - H), (0, Dp - D)))
    b1p = jnp.pad(b1.astype(jnp.float32), (0, Hp - H)).reshape(1, Hp)
    b2p = jnp.pad(b2.astype(jnp.float32), (0, Dp - D)).reshape(1, Dp)
    return w1p, b1p, w2p, b2p


def feed_forward(x, params, mask=None, *, out_dtype=None, tile_m=None, tile_h=None,
                 force_stream=False):
    """x: (B,S,D); params: prepare_ff_params(w1,b1,w2,b2); mask: optional (B,S) bool."""
    w1p, b1p, w2p, b2p = params
    B, S, D = x.shape
    Dp, Hp = w1p.shape
    M = B * S
    out_dtype = jnp.dtype(x.dtype if out_dtype is None else out_dtype)

    cfg = _tpu_defaults()
    tm_target = tile_m if tile_m is not None else cfg["tile_m"]
    TM = tm_target if M >= tm_target else _round_up(M, 8)

    x_bytes = x.dtype.itemsize
    out_bytes = out_dtype.itemsize

    stream = force_stream or (
        _resident_vmem_bytes(TM, Dp, Hp, x_bytes, out_bytes) > cfg["vmem_budget"])
    TH = Hp
    if stream:
        TH = _pick_tile_h(Hp, tile_h if tile_h is not None else cfg["tile_h"])
        while (_stream_vmem_bytes(TM, TH, Dp, x_bytes, out_bytes) > cfg["vmem_budget"]
               and TM > 256):
            TM //= 2

    Mp = _round_up(M, TM)

    x2d = x.reshape(M, D)
    if Dp != D or Mp != M:
        # Unavoidable copy: pad (cast to bf16 so the copy is half-width).
        x2d = jnp.pad(x2d.astype(jnp.bfloat16), ((0, Mp - M), (0, Dp - D)))

    has_mask = mask is not None
    mask2d = None
    if has_mask:
        mask2d = mask.reshape(M, 1).astype(jnp.float32)
        if Mp != M:
            mask2d = jnp.pad(mask2d, ((0, Mp - M), (0, 0)))

    out2d = _ff_pallas_jit(x2d, w1p, b1p, w2p, b2p, mask2d,
                           tm=TM, th=TH, stream=stream, has_mask=has_mask,
                           vmem_limit=cfg["vmem_limit"], out_dtype=out_dtype)

    if Mp != M or Dp != D:
        out2d = out2d[:M, :D]
    return out2d.reshape(B, S, D)


def _reference(x, w1, b1, w2, b2, mask=None):
    h = jnp.dot(x, w1) + b1
    h = h * jax.nn.sigmoid(h)
    out = jnp.dot(h, w2) + b2
    if mask is not None:
        out = jnp.where(mask[..., None], out, 0.0)
    return out


if __name__ == "__main__":
    key = jax.random.PRNGKey(0)

    def make_inputs(key, B, S, D, mult):
        H = D * mult
        kx, k1, k2, k3, k4, km = jax.random.split(key, 6)
        x = jax.random.normal(kx, (B, S, D), dtype=jnp.float32)
        lim1 = 1.0 / (D ** 0.5)
        lim2 = 1.0 / (H ** 0.5)
        w1 = jax.random.uniform(k1, (D, H), minval=-lim1, maxval=lim1, dtype=jnp.float32)
        b1 = jax.random.uniform(k2, (H,), minval=-lim1, maxval=lim1, dtype=jnp.float32)
        w2 = jax.random.uniform(k3, (H, D), minval=-lim2, maxval=lim2, dtype=jnp.float32)
        b2 = jax.random.uniform(k4, (D,), minval=-lim2, maxval=lim2, dtype=jnp.float32)
        mask = jax.random.bernoulli(km, 0.8, (B, S))   # True = keep
        return x, w1, b1, w2, b2, mask

    k_small, k_big = jax.random.split(key)

    # Small shapes consistent with the module: dim=32, mult=4 -> hidden=128.
    x, w1, b1, w2, b2, mask = make_inputs(k_small, B=2, S=8, D=32, mult=4)
    params = prepare_ff_params(w1, b1, w2, b2)   # hoisted one-time weight cast/pad

    # No-mask path (resident-weight kernel).  bf16 MXU -> loosened tolerance.
    out = jax.block_until_ready(feed_forward(x, params))
    ref = _reference(x, w1, b1, w2, b2)
    assert jnp.allclose(out, ref, atol=5e-2, rtol=5e-2), "no-mask mismatch"

    # Masked path.
    out_m = jax.block_until_ready(feed_forward(x, params, mask=mask))
    ref_m = _reference(x, w1, b1, w2, b2, mask=mask)
    assert jnp.allclose(out_m, ref_m, atol=5e-2, rtol=5e-2), "masked mismatch"

    # Larger case: multi-tile row grid on the resident path.  D % 128 == 0 and no row
    # padding, so x is passed through with no padded copy and cast in-kernel.
    xb, w1b, b1b, w2b, b2b, maskb = make_inputs(k_big, B=2, S=256, D=128, mult=4)
    paramsb = prepare_ff_params(w1b, b1b, w2b, b2b)
    out_b = jax.block_until_ready(feed_forward(xb, paramsb, mask=maskb, tile_m=128))
    ref_b = _reference(xb, w1b, b1b, w2b, b2b, mask=maskb)
    assert jnp.allclose(out_b, ref_b, atol=5e-2, rtol=5e-2), "row-grid mismatch"

    # Force the H-tiled streaming/accumulator path (what large models use on v7x).
    out_s = jax.block_until_ready(
        feed_forward(xb, paramsb, mask=maskb, tile_m=128, tile_h=128, force_stream=True))
    assert jnp.allclose(out_s, ref_b, atol=5e-2, rtol=5e-2), "stream-path mismatch"

    # Streaming path without a mask.
    out_s2 = jax.block_until_ready(
        feed_forward(xb, paramsb, tile_m=256, tile_h=256, force_stream=True))
    ref_b2 = _reference(xb, w1b, b1b, w2b, b2b)
    assert jnp.allclose(out_s2, ref_b2, atol=5e-2, rtol=5e-2), "stream-no-mask mismatch"

    print("KERNEL_OK")
</pallas_src>

<mosaic_0001>
module attributes {stable_mosaic.version = 11 : i64} {
  func.func @kernel(%arg0: i32, %arg1: memref<16x128xbf16, #tpu.memory_space<vmem>>, %arg2: memref<128x128xbf16, #tpu.memory_space<vmem>>, %arg3: memref<1x128xf32, #tpu.memory_space<vmem>>, %arg4: memref<128x128xbf16, #tpu.memory_space<vmem>>, %arg5: memref<1x128xf32, #tpu.memory_space<vmem>>, %arg6: memref<16x128xf32, #tpu.memory_space<vmem>>) attributes {dimension_semantics = [#tpu.dimension_semantics<parallel>], iteration_bounds = array<i64: 1>, scalar_prefetch = 0 : i64, scratch_operands = 0 : i64, tpu.core_type = #tpu.core_type<tc>, window_params = [{transform_indices = @transform_0, window_bounds = array<i64: 16, 128>}, {pipeline_mode = #tpu.pipeline_mode<synchronous>, transform_indices = @transform_1, window_bounds = array<i64: 128, 128>}, {pipeline_mode = #tpu.pipeline_mode<synchronous>, transform_indices = @transform_2, window_bounds = array<i64: 1, 128>}, {pipeline_mode = #tpu.pipeline_mode<synchronous>, transform_indices = @transform_3, window_bounds = array<i64: 128, 128>}, {pipeline_mode = #tpu.pipeline_mode<synchronous>, transform_indices = @transform_4, window_bounds = array<i64: 1, 128>}, {transform_indices = @transform_5, window_bounds = array<i64: 16, 128>}]} {
    %c0 = arith.constant 0 : index
    %c0_0 = arith.constant 0 : index
    %0 = vector.load %arg1[%c0, %c0_0] : memref<16x128xbf16, #tpu.memory_space<vmem>>, vector<16x128xbf16>
    %c0_1 = arith.constant 0 : index
    %c0_2 = arith.constant 0 : index
    %1 = vector.load %arg2[%c0_1, %c0_2] : memref<128x128xbf16, #tpu.memory_space<vmem>>, vector<128x128xbf16>
    %cst = arith.constant dense<0.000000e+00> : vector<16x128xf32>
    %2 = tpu.matmul %0, %1, %cst {dimension_numbers = #tpu.dot_dimension_numbers<[1], [0], [0], [1], [0, 0, 1, 1], [], []>} : vector<16x128xbf16>, vector<128x128xbf16>, vector<16x128xf32> -> vector<16x128xf32>
    %c0_3 = arith.constant 0 : index
    %c0_4 = arith.constant 0 : index
    %3 = vector.load %arg3[%c0_3, %c0_4] : memref<1x128xf32, #tpu.memory_space<vmem>>, vector<1x128xf32>
    %4 = vector.broadcast %3 : vector<1x128xf32> to vector<16x128xf32>
    %5 = arith.addf %2, %4 : vector<16x128xf32>
    %6 = arith.negf %5 : vector<16x128xf32>
    %7 = math.exp %6 : vector<16x128xf32>
    %cst_5 = arith.constant 1.000000e+00 : f32
    %8 = vector.broadcast %cst_5 : f32 to vector<16x128xf32>
    %9 = arith.addf %8, %7 : vector<16x128xf32>
    %10 = arith.divf %8, %9 : vector<16x128xf32>
    %11 = arith.mulf %5, %10 : vector<16x128xf32>
    %12 = arith.truncf %11 : vector<16x128xf32> to vector<16x128xbf16>
    %c0_6 = arith.constant 0 : index
    %c0_7 = arith.constant 0 : index
    %13 = vector.load %arg4[%c0_6, %c0_7] : memref<128x128xbf16, #tpu.memory_space<vmem>>, vector<128x128xbf16>
    %cst_8 = arith.constant dense<0.000000e+00> : vector<16x128xf32>
    %14 = tpu.matmul %12, %13, %cst_8 {dimension_numbers = #tpu.dot_dimension_numbers<[1], [0], [0], [1], [0, 0, 1, 1], [], []>} : vector<16x128xbf16>, vector<128x128xbf16>, vector<16x128xf32> -> vector<16x128xf32>
    %c0_9 = arith.constant 0 : index
    %c0_10 = arith.constant 0 : index
    %15 = vector.load %arg5[%c0_9, %c0_10] : memref<1x128xf32, #tpu.memory_space<vmem>>, vector<1x128xf32>
    %16 = vector.broadcast %15 : vector<1x128xf32> to vector<16x128xf32>
    %17 = arith.addf %14, %16 : vector<16x128xf32>
    %c0_11 = arith.constant 0 : index
    %c0_12 = arith.constant 0 : index
    %18 = vector.load %arg6[%c0_11, %c0_12] : memref<16x128xf32, #tpu.memory_space<vmem>>, vector<16x128xf32>
    tpu.vector_store %arg6[%c0_11, %c0_12], %17 {strides = array<i32>} : memref<16x128xf32, #tpu.memory_space<vmem>>, vector<16x128xf32>,
    return
  }
  func.func @transform_0(%arg0: i32) -> (i32, i32) {
    %c0_i32 = arith.constant 0 : i32
    %c0_i32_0 = arith.constant 0 : i32
    return %arg0, %c0_i32 : i32, i32
  }
  func.func @transform_1(%arg0: i32) -> (i32, i32) {
    %c0_i32 = arith.constant 0 : i32
    %c0_i32_0 = arith.constant 0 : i32
    %c0_i32_1 = arith.constant 0 : i32
    return %c0_i32, %c0_i32_0 : i32, i32
  }
  func.func @transform_2(%arg0: i32) -> (i32, i32) {
    %c0_i32 = arith.constant 0 : i32
    %c0_i32_0 = arith.constant 0 : i32
    %c0_i32_1 = arith.constant 0 : i32
    return %c0_i32, %c0_i32_0 : i32, i32
  }
  func.func @transform_3(%arg0: i32) -> (i32, i32) {
    %c0_i32 = arith.constant 0 : i32
    %c0_i32_0 = arith.constant 0 : i32
    %c0_i32_1 = arith.constant 0 : i32
    return %c0_i32, %c0_i32_0 : i32, i32
  }
  func.func @transform_4(%arg0: i32) -> (i32, i32) {
    %c0_i32 = arith.constant 0 : i32
    %c0_i32_0 = arith.constant 0 : i32
    %c0_i32_1 = arith.constant 0 : i32
    return %c0_i32, %c0_i32_0 : i32, i32
  }
  func.func @transform_5(%arg0: i32) -> (i32, i32) {
    %c0_i32 = arith.constant 0 : i32
    %c0_i32_0 = arith.constant 0 : i32
    return %arg0, %c0_i32 : i32, i32
  }
}

</mosaic_0001>

<bundles_post_ra>
// kernel: _ff_pallas.1
= control target key start
LH: loop header
LB: loop body
LE: loop exit
PB: predicated region body
PF: predicated region fallthrough
CT: control target
= control target key end

     0   :  { %10 = vsyncpa [#allocation3], 0  ;;  %s740_s0 = inlined_call_operand.hbm [shape: bf16[16,128], index: 0, kind: input, shape index: {}]   ;;  %s741_s1 = inlined_call_operand.hbm [shape: bf16[128,128], index: 1, kind: input, shape index: {}]   ;;  %s742_s2 = inlined_call_operand.hbm [shape: f32[1,128], index: 2, kind: input, shape index: {}]   ;;  %s743_s3 = inlined_call_operand.hbm [shape: bf16[128,128], index: 3, kind: input, shape index: {}]   ;;  %s744_s4 = inlined_call_operand.hbm [shape: f32[1,128], index: 4, kind: input, shape index: {}]   ;;  %s745_s5 = inlined_call_operand.hbm [shape: f32[16,128], index: 5, kind: output, shape index: {}]  }
   0x1   :  { %11 = vsyncpa [#allocation6], 0 }
   0x2   :  { %12 = vsyncpa [#allocation9], 0 }
   0x3   :  { %13 = vsyncpa [#allocation4], 0  ;;  %s610_s18 = smov [#allocation5]   ;;  %s611_s20 = smov [#allocation8]  }
   0x4   :  { %s31_s19 = sshll.u32 %s610_s18, 4  ;;  %s53_s21 = sshll.u32 %s611_s20, 4  ;;  %s32_s19 = int_to_ptr.vmem [resolvable:$true] %s31_s19  ;;  %s652_s21 = int_to_ptr.vmem [resolvable:$true] %s53_s21 }
   0x5   :  { %s470_s24 = scalar_lea.hbm %s741_s1, 1024 }
   0x6   :  { %p471_p0 = scmp.ne.s32.totalorder %s741_s1, %s470_s24  ;;  %p474_p1 = scmp.lt.u32.totalorder %s470_s24, %s741_s1 }
   0x8   :  { %p476_p2 = pnand %p474_p1, %p471_p0 }
   0xa   :  { %479 = shalt.err (!%p476_p2)
}
   0xb   :  { %s480_s29 = scalar_lea.vmem %s32_s19, 1024  ;;  %p485_p4 = scmp.lt.s32.totalorder %s32_s19, %s32_s19 }
   0xc   :  { %p481_p3 = scmp.ne.s32.totalorder %s32_s19, %s480_s29  ;;  %p486_p5 = scmp.lt.s32.totalorder %s480_s29, %s480_s29 }
   0xe   :  { %p487_p6 = por %p486_p5, %p485_p4 }
  0x10   :  { %p488_p7 = pnand %p487_p6, %p481_p3 }
  0x12   :  { %491 = shalt.err (!%p488_p7)
}
  0x13   :  { %s612_s30 = smov 64   ;;  %s613_s6 = smov 4  }
  0x14   :  { %37 = dma.hbm_to_vmem [thread:$0]  %s741_s1, 1024, %s32_s19, [#allocation6], %s612_s30, %s612_s30, %s613_s6  }
  0x15   :  { %s492_s11 = scalar_lea.hbm %s743_s3, 1024 }
  0x16   :  { %p493_p8 = scmp.ne.s32.totalorder %s743_s3, %s492_s11  ;;  %p496_p9 = scmp.lt.u32.totalorder %s492_s11, %s743_s3 }
  0x18   :  { %p498_p10 = pnand %p496_p9, %p493_p8 }
  0x1a   :  { %501 = shalt.err (!%p498_p10)
}
  0x1b   :  { %s502_s16 = scalar_lea.vmem %s652_s21, 1024  ;;  %p507_p12 = scmp.lt.s32.totalorder %s652_s21, %s652_s21 }
  0x1c   :  { %p503_p11 = scmp.ne.s32.totalorder %s652_s21, %s502_s16  ;;  %p508_p13 = scmp.lt.s32.totalorder %s502_s16, %s502_s16 }
  0x1e   :  { %p509_p0 = por %p508_p13, %p507_p12 }
  0x20   :  { %p510_p1 = pnand %p509_p0, %p503_p11 }
  0x22   :  { %513 = shalt.err (!%p510_p1)
}
  0x23   :  { %59 = dma.hbm_to_vmem [thread:$0]  %s743_s3, 1024, %s652_s21, [#allocation9], %s612_s30, %s612_s30, %s613_s6  }
  0x24   :  { %s614_s18 = smov [#allocation2]   ;;  %s615_s20 = smov [#allocation7]  }
  0x25   :  { %s19_s19 = sshll.u32 %s614_s18, 4  ;;  %s44_s22 = sshll.u32 %s615_s20, 4  ;;  %s20_s19 = int_to_ptr.vmem [resolvable:$true] %s19_s19  ;;  %s45_s22 = int_to_ptr.vmem [resolvable:$true] %s44_s22 }
  0x26   :  { %s514_s25 = scalar_lea.hbm %s740_s0, 128 }
  0x27   :  { %p515_p2 = scmp.ne.s32.totalorder %s740_s0, %s514_s25  ;;  %p518_p3 = scmp.lt.u32.totalorder %s514_s25, %s740_s0 }
  0x29   :  { %p520_p4 = pnand %p518_p3, %p515_p2 }
  0x2b   :  { %523 = shalt.err (!%p520_p4)
}
  0x2c   :  { %s524_s3 = scalar_lea.vmem %s20_s19, 128  ;;  %p529_p6 = scmp.lt.s32.totalorder %s20_s19, %s20_s19 }
  0x2d   :  { %p525_p5 = scmp.ne.s32.totalorder %s20_s19, %s524_s3  ;;  %p530_p7 = scmp.lt.s32.totalorder %s524_s3, %s524_s3 }
  0x2f   :  { %p531_p8 = por %p530_p7, %p529_p6 }
  0x31   :  { %p532_p9 = pnand %p531_p8, %p525_p5 }
  0x33   :  { %535 = shalt.err (!%p532_p9)
}
  0x34   :  { %25 = dma.hbm_to_vmem [thread:$0]  %s740_s0, 128, %s20_s19, [#allocation3], %s612_s30, %s612_s30, %s613_s6  }
  0x35   :  { %s536_s10 = scalar_lea.hbm %s742_s2, 16 }
  0x36   :  { %p537_p10 = scmp.ne.s32.totalorder %s742_s2, %s536_s10  ;;  %p540_p11 = scmp.lt.u32.totalorder %s536_s10, %s742_s2 }
  0x38   :  { %p542_p12 = pnand %p540_p11, %p537_p10 }
  0x3a   :  { %545 = shalt.err (!%p542_p12)
}
  0x3b   :  { %s546_s15 = scalar_lea.vmem %s45_s22, 16  ;;  %s550_s16 = scalar_lea.vmem %s45_s22, 32 }
  0x3c   :  { %p547_p13 = scmp.ne.s32.totalorder %s45_s22, %s546_s15  ;;  %p551_p0 = scmp.lt.s32.totalorder %s45_s22, %s45_s22 }
  0x3d   :  { %p552_p1 = scmp.lt.s32.totalorder %s550_s16, %s546_s15 }
  0x3f   :  { %p553_p2 = por %p552_p1, %p551_p0 }
  0x41   :  { %p554_p3 = pnand %p553_p2, %p547_p13 }
  0x43   :  { %557 = shalt.err (!%p554_p3)
}
  0x44   :  { %47 = dma.hbm_to_vmem [thread:$0]  %s742_s2, 16, %s45_s22, [#allocation6]  }
  0x45   :  { %s616_s6 = smov [#allocation10]   ;;  %s558_s19 = scalar_lea.hbm %s744_s4, 16 }
  0x46   :  { %s66_s1 = sshll.u32 %s616_s6, 4  ;;  %p559_p4 = scmp.ne.s32.totalorder %s744_s4, %s558_s19  ;;  %s67_s1 = int_to_ptr.vmem [resolvable:$true] %s66_s1 }
  0x47   :  { %p562_p5 = scmp.lt.u32.totalorder %s558_s19, %s744_s4 }
  0x49   :  { %p564_p6 = pnand %p562_p5, %p559_p4 }
  0x4b   :  { %567 = shalt.err (!%p564_p6)
}
  0x4c   :  { %s568_s26 = scalar_lea.vmem %s67_s1, 16  ;;  %s572_s2 = scalar_lea.vmem %s67_s1, 32 }
  0x4d   :  { %p569_p7 = scmp.ne.s32.totalorder %s67_s1, %s568_s26  ;;  %p573_p8 = scmp.lt.s32.totalorder %s67_s1, %s67_s1 }
  0x4e   :  { %p574_p9 = scmp.lt.s32.totalorder %s572_s2, %s568_s26 }
  0x50   :  { %p575_p10 = por %p574_p9, %p573_p8 }
  0x52   :  { %p576_p11 = pnand %p575_p10, %p569_p7 }
  0x54   :  { %579 = shalt.err (!%p576_p11)
}
  0x55   :  { %69 = dma.hbm_to_vmem [thread:$0]  %s744_s4, 16, %s67_s1, [#allocation9]  }
  0x56   :  { %602 = dma.done.wait [#allocation3], 128  }
  0x57   :  { %603 = vsyncadd [#allocation3], 4294967168 }
  0x58   :  { %604 = dma.done.wait [#allocation6], 1040  }
  0x59   :  { %605 = vsyncadd [#allocation6], 4294966256 }
  0x5a   :  { %606 = dma.done.wait [#allocation9], 1040  }
  0x5b   :  { %607 = vsyncadd [#allocation9], 4294966256  ;;  %v617_v0 = vmov 0.0   ;;  %vm618_vm0 = vmmov 0   ;;  %v445_v1 = vld [vmem:[#allocation5] sm:$0xff]   ;;  %v446_v2 = vld [vmem:[#allocation5 + $0x8] sm:$0xff]  }
  0x5c   :  { %393 = vmatprep.subr.bf16.mxu0 %v617_v0  ;;  %409 = vmatprep.mubr.msk.bf16.mxu0 %vm618_vm0, %v617_v0  ;;  %v447_v3 = vld [vmem:[#allocation5 + $0x10] sm:$0xff]   ;;  %v448_v4 = vld [vmem:[#allocation5 + $0x18] sm:$0xff]   ;;  %v449_v5 = vld [vmem:[#allocation5 + $0x20] sm:$0xff]   ;;  %s619_s4 = smov [#allocation11]  }
  0x5d   :  { %413 = vmatprep.subr.bf16.mxu1 %v617_v0  ;;  %429 = vmatprep.mubr.msk.bf16.mxu1 %vm618_vm0, %v617_v0  ;;  %v450_v6 = vld [vmem:[#allocation5 + $0x28] sm:$0xff]   ;;  %v451_v7 = vld [vmem:[#allocation5 + $0x30] sm:$0xff]   ;;  %v452_v8 = vld [vmem:[#allocation5 + $0x38] sm:$0xff]   ;;  %s340_s28 = sshll.u32 %s619_s4, 4  ;;  %s341_s28 = int_to_ptr.vmem [resolvable:$true] %s340_s28 }
  0x5e   :  { %394 = vmatpush3.bf16.msra.mxu0 %v445_v1  ;;  %v453_v9 = vld [vmem:[#allocation2] sm:$0xff]   ;;  %v454_v10 = vld [vmem:[#allocation8] sm:$0xff]   ;;  %v455_v11 = vld [vmem:[#allocation8 + $0x8] sm:$0xff]   ;;  %s580_s29 = scalar_lea.vmem %s341_s28, 256  ;;  %p585_p13 = scmp.lt.s32.totalorder %s341_s28, %s341_s28 }
  0x5f   :  { %395 = vmatprep.subr.bf16.mxu0 %v617_v0  ;;  %414 = vmatpush3.bf16.msra.mxu1 %v454_v10  ;;  %v456_v12 = vld [vmem:[#allocation8 + $0x10] sm:$0xff]   ;;  %v457_v13 = vld [vmem:[#allocation8 + $0x18] sm:$0xff]   ;;  %v458_v14 = vld [vmem:[#allocation8 + $0x20] sm:$0xff]   ;;  %p581_p12 = scmp.ne.s32.totalorder %s341_s28, %s580_s29  ;;  %p586_p0 = scmp.lt.s32.totalorder %s580_s29, %s580_s29 }
  0x60   :  { %415 = vmatprep.subr.bf16.mxu1 %v617_v0  ;;  %v459_v15 = vld [vmem:[#allocation8 + $0x28] sm:$0xff]   ;;  %v460_v16 = vld [vmem:[#allocation8 + $0x30] sm:$0xff]   ;;  %v461_v17 = vld [vmem:[#allocation8 + $0x38] sm:$0xff]  }
  0x61   :  { %v354_v18 = vld [vmem:[#allocation7] ss:$0 sm:$0xff]  ;;  %v366_v36 = vld [vmem:[#allocation10] ss:$0 sm:$0xff]  ;;  %p587_p1 = por %p586_p0, %p585_p13 }
  0x62   :  { %396 = vmatpush3.bf16.msra.mxu0 %v446_v2 }
  0x63   :  { %397 = vmatprep.subr.bf16.mxu0 %v617_v0  ;;  %416 = vmatpush3.bf16.msra.mxu1 %v455_v11  ;;  %p588_p2 = pnand %p587_p1, %p581_p12 }
  0x64   :  { %417 = vmatprep.subr.bf16.mxu1 %v617_v0 }
  0x66   :  { %398 = vmatpush3.bf16.msra.mxu0 %v447_v3 }
  0x67   :  { %399 = vmatprep.subr.bf16.mxu0 %v617_v0  ;;  %418 = vmatpush3.bf16.msra.mxu1 %v456_v12 }
  0x68   :  { %419 = vmatprep.subr.bf16.mxu1 %v617_v0 }
  0x6a   :  { %400 = vmatpush3.bf16.msra.mxu0 %v448_v4 }
  0x6b   :  { %401 = vmatprep.subr.bf16.mxu0 %v617_v0  ;;  %420 = vmatpush3.bf16.msra.mxu1 %v457_v13 }
  0x6c   :  { %421 = vmatprep.subr.bf16.mxu1 %v617_v0 }
  0x6e   :  { %402 = vmatpush3.bf16.msra.mxu0 %v449_v5 }
  0x6f   :  { %403 = vmatprep.subr.bf16.mxu0 %v617_v0  ;;  %422 = vmatpush3.bf16.msra.mxu1 %v458_v14 }
  0x70   :  { %423 = vmatprep.subr.bf16.mxu1 %v617_v0 }
  0x72   :  { %404 = vmatpush3.bf16.msra.mxu0 %v450_v6 }
  0x73   :  { %405 = vmatprep.subr.bf16.mxu0 %v617_v0  ;;  %424 = vmatpush3.bf16.msra.mxu1 %v459_v15 }
  0x74   :  { %425 = vmatprep.subr.bf16.mxu1 %v617_v0 }
  0x76   :  { %406 = vmatpush3.bf16.msra.mxu0 %v451_v7 }
  0x77   :  { %407 = vmatprep.subr.bf16.mxu0 %v617_v0  ;;  %426 = vmatpush3.bf16.msra.mxu1 %v460_v16 }
  0x78   :  { %427 = vmatprep.subr.bf16.mxu1 %v617_v0 }
  0x7a   :  { %408 = vmatpush3.bf16.msra.mxu0 %v452_v8 }
  0x7b   :  { %428 = vmatpush3.bf16.msra.mxu1 %v461_v17 }
  0x7d   :  { %410 = vmatmul.mubr.bf16.vlgmr.msra.gmra.mrb[0].mxu0 %v453_v9 }
 0x150   :  { %v199_v19 = vpop.f32.mrb[0].mxu0 }
 0x151   :  { %v200_v20 = vadd.f32 %v354_v18, %v199_v19  ;;  %v411_v21 = vpop.f32.mrb[1].mxu0 }
 0x152   :  { %v202_v22 = vpop.f32.mrb[2].mxu0 }
 0x153   :  { %v364_v23 = vmul.f32 -1.442695, %v200_v20  ;;  %v203_v24 = vadd.f32 %v354_v18, %v202_v22  ;;  %v412_v25 = vpop.f32.mrb[3].mxu0 }
 0x155   :  { %462 = vpow2.f32 %v364_v23  ;;  %v365_v26 = vmul.f32 -1.442695, %v203_v24 }
 0x157   :  { %464 = vpow2.f32 %v365_v26 }
 0x15f   :  { %v463_v27 = vpop.eup %462 }
 0x160   :  { %v212_v28 = vadd.f32 1.0, %v463_v27 }
 0x161   :  { %v465_v29 = vpop.eup %464 }
 0x162   :  { %466 = vrcp.f32 %v212_v28  ;;  %v213_v30 = vadd.f32 1.0, %v465_v29 }
 0x164   :  { %468 = vrcp.f32 %v213_v30 }
 0x16c   :  { %v467_v31 = vpop.eup %466 }
 0x16d   :  { %v218_v33 = vmul.f32 %v467_v31, %v200_v20 }
 0x16e   :  { %v469_v32 = vpop.eup %468 }
 0x16f   :  { %v219_v34 = vmul.f32 %v469_v32, %v203_v24 }
 0x171   :  { %v220_v35 = vpack.c.bf16 %v219_v34, %v218_v33 }
 0x173   :  { %430 = vmatmul.mubr.bf16.vlgmr.msra.gmra.mrb[0].mxu1 %v220_v35 }
 0x246   :  { %v326_v37 = vpop.f32.mrb[0].mxu1 }
 0x247   :  { %v327_v38 = vadd.f32 %v366_v36, %v326_v37  ;;  %v431_v39 = vpop.f32.mrb[1].mxu1 }
 0x248   :  { %v329_v40 = vpop.f32.mrb[2].mxu1 }
 0x249   :  { %333 = vst [vmem:[#allocation11] sm:$0xff] %v327_v38  ;;  %v330_v41 = vadd.f32 %v366_v36, %v329_v40  ;;  %v432_v42 = vpop.f32.mrb[3].mxu1 }
 0x24b   :  { %334 = vst [vmem:[#allocation11 + $0x8] sm:$0xff] %v330_v41 }
 0x24c   :  { %591 = shalt.err (!%p588_p2)
}
 0x24d   :  { %s592_s7 = scalar_lea.hbm %s745_s5, 256 }
 0x24e   :  { %p593_p3 = scmp.ne.s32.totalorder %s745_s5, %s592_s7  ;;  %p596_p4 = scmp.lt.u32.totalorder %s592_s7, %s745_s5 }
 0x250   :  { %p598_p5 = pnand %p596_p4, %p593_p3 }
 0x252   :  { %601 = shalt.err (!%p598_p5)
}
 0x253   :  { %s620_s12 = smov 128   ;;  %s621_s13 = smov 8  }
 0x254   :  { %346 = dma.vmem_to_hbm [thread:$0]  %s341_s28, 256, %s745_s5, [#allocation4], %s620_s12, %s620_s12, %s621_s13  }
 0x255   :  { %608 = dma.done.wait [#allocation4], 256  }
 0x256   :  { %609 = vsyncadd [#allocation4], 4294967040 }
 0x257   :  { %350 = vsyncpa [#allocation3], 1 }
 0x258   :  { %351 = vsyncpa [#allocation6], 1 }
 0x259   :  { %352 = vsyncpa [#allocation9], 1 }
 0x25a   :  { %353 = vsyncpa [#allocation4], 1 }

</bundles_post_ra>
